<compile_context>
chip_gen: v6e
topology: v6e:2x2x1
jax: 0.10.0
libtpu: 0.0.40
codegen_flags: <defaults>
</compile_context>

<pallas_src>
import jax
import jax.numpy as jnp
from jax.experimental import pallas as pl
from jax.experimental.pallas import tpu as pltpu


# ---------------------------------------------------------------------------
# Kernel
# ---------------------------------------------------------------------------
def highway_kernel(x_ref, w_ref, b_ref, o_ref):
    """All highway layers fused, one lane tile of the (C, N*L) slab.

    x_ref : (C, LT)      input slab tile (features on sublanes, batch*seq lanes)
    w_ref : (n, 2C, C)   fused [gate; linear] weights, PyTorch (out, in) layout
    b_ref : (n, 2C, 1)   fused biases (f32, broadcast over lanes)
    o_ref : (C, LT)      output slab tile
    """
    C = x_ref.shape[0]
    n_layers = w_ref.shape[0]

    x = x_ref[...]                      # native dtype; promoted by f32 results

    # Static unroll is fine for small n_layers; switch to lax.fori_loop with
    # dynamic w_ref[i]/b_ref[i] indexing if n_layers grows into the tens.
    for i in range(n_layers):
        # One fused (2C, C) @ (C, LT) MXU matmul per layer (gate + nonlinear),
        # f32 accumulation.  x is cast to the weight dtype (no-op for f32,
        # bf16 when use_bf16_matmul=True in the wrapper).
        y = jnp.dot(w_ref[i], x.astype(w_ref.dtype),
                    preferred_element_type=jnp.float32) + b_ref[i]
        gate = jax.nn.sigmoid(y[:C, :])         # static sublane-aligned slices
        nonlinear = jnp.maximum(y[C:, :], 0.0)
        # x + g*(h - x)  ==  g*h + (1 - g)*x, with one fewer VPU multiply.
        x = x + gate * (nonlinear - x)

    o_ref[...] = x.astype(o_ref.dtype)          # single lane-dense store


# ---------------------------------------------------------------------------
# Wrapper
# ---------------------------------------------------------------------------
def highway_pallas(x, w_gate, b_gate, w_lin, b_lin, *,
                   use_bf16_matmul=False, lane_tile=512):
    """x: (N, C, L); w_*: (n_layers, C, C); b_*: (n_layers, C).

    Note: C should be a multiple of 8 (f32 sublane tile) for clean layouts.
    """
    N, C, L = x.shape
    n_layers = w_gate.shape[0]

    # Fuse gate + linear projections into one (2C, C) weight per layer.
    w_cat = jnp.concatenate([w_gate, w_lin], axis=1)             # (n, 2C, C)
    b_cat = jnp.concatenate([b_gate, b_lin], axis=1)             # (n, 2C)
    b_cat = b_cat.reshape(n_layers, 2 * C, 1).astype(jnp.float32)
    if use_bf16_matmul:
        w_cat = w_cat.astype(jnp.bfloat16)       # native MXU input format

    # Lane-dense slab: (N, C, L) -> (C, N*L).  Layout plumbing only.
    total = N * L
    x_slab = jnp.transpose(x, (1, 0, 2)).reshape(C, total)

    # Pick the largest 128-multiple lane tile that divides the slab width
    # (>=512 preferred, >=256 for v6e/v7x MXU width); else take the full slab.
    lt = None
    for cand in (lane_tile, 512, 256, 128):
        if cand % 128 == 0 and total % cand == 0:
            lt = cand
            break
    if lt is None:
        lt = total                              # full-extent block is always legal

    # NOTE(v7x scaling): at production n_layers/C, the constant weight blocks
    # could additionally be single-buffered (pipeline_mode=pl.Buffered(1)) to
    # save VMEM; unnecessary at these sizes so we keep the default.
    out_slab = pl.pallas_call(
        highway_kernel,
        out_shape=jax.ShapeDtypeStruct((C, total), x.dtype),
        grid=(total // lt,),
        in_specs=[
            pl.BlockSpec((C, lt), lambda j: (0, j)),                  # x slab
            pl.BlockSpec((n_layers, 2 * C, C), lambda j: (0, 0, 0)),  # weights
            pl.BlockSpec((n_layers, 2 * C, 1), lambda j: (0, 0, 0)),  # biases
        ],
        out_specs=pl.BlockSpec((C, lt), lambda j: (0, j)),
        compiler_params=pltpu.CompilerParams(
            dimension_semantics=("parallel",)),
    )(x_slab, w_cat, b_cat)

    # Back to (N, C, L).
    return jnp.transpose(out_slab.reshape(C, N, L), (1, 0, 2))


# ---------------------------------------------------------------------------
# Pure-JAX reference (mirrors the PyTorch forward exactly)
# ---------------------------------------------------------------------------
def highway_ref(x, w_gate, b_gate, w_lin, b_lin):
    xt = jnp.transpose(x, (0, 2, 1))            # (N, L, C)
    for i in range(w_gate.shape[0]):
        g = jax.nn.sigmoid(xt @ w_gate[i].T + b_gate[i])
        h = jnp.maximum(xt @ w_lin[i].T + b_lin[i], 0.0)
        xt = g * h + (1.0 - g) * xt
    return jnp.transpose(xt, (0, 2, 1))         # (N, C, L)


# ---------------------------------------------------------------------------
if __name__ == "__main__":
    # Small shapes consistent with Highway(layer_num, size): x is (N, size, L).
    # N*L = 1024 -> lane tile 512, grid of 2 steps (exercises the tiled path).
    N, SIZE, L, NLAYERS = 4, 32, 256, 2

    key = jax.random.PRNGKey(0)
    kx, kwg, kbg, kwl, kbl = jax.random.split(key, 5)

    x = jax.random.normal(kx, (N, SIZE, L), dtype=jnp.float32)

    scale = 1.0 / (SIZE ** 0.5)
    w_gate = scale * jax.random.normal(kwg, (NLAYERS, SIZE, SIZE), jnp.float32)
    b_gate = scale * jax.random.normal(kbg, (NLAYERS, SIZE), jnp.float32)
    w_lin = scale * jax.random.normal(kwl, (NLAYERS, SIZE, SIZE), jnp.float32)
    b_lin = scale * jax.random.normal(kbl, (NLAYERS, SIZE), jnp.float32)

    out = highway_pallas(x, w_gate, b_gate, w_lin, b_lin)
    out = jax.block_until_ready(out)

    ref = highway_ref(x, w_gate, b_gate, w_lin, b_lin)
    assert out.shape == (N, SIZE, L)
    max_err = float(jnp.max(jnp.abs(out - ref)))
    assert jnp.allclose(out, ref, atol=5e-4, rtol=5e-4), max_err

    print("KERNEL_OK")
</pallas_src>

<mosaic_0001>
module attributes {stable_mosaic.version = 11 : i64} {
  func.func @highway_kernel(%arg0: i32, %arg1: memref<32x512xf32, #tpu.memory_space<vmem>>, %arg2: memref<2x64x32xf32, #tpu.memory_space<vmem>>, %arg3: memref<2x64x1xf32, #tpu.memory_space<vmem>>, %arg4: memref<32x512xf32, #tpu.memory_space<vmem>>) attributes {dimension_semantics = [#tpu.dimension_semantics<parallel>], iteration_bounds = array<i64: 2>, scalar_prefetch = 0 : i64, scratch_operands = 0 : i64, tpu.core_type = #tpu.core_type<tc>, window_params = [{transform_indices = @transform_0, window_bounds = array<i64: 32, 512>}, {pipeline_mode = #tpu.pipeline_mode<synchronous>, transform_indices = @transform_1, window_bounds = array<i64: 2, 64, 32>}, {pipeline_mode = #tpu.pipeline_mode<synchronous>, transform_indices = @transform_2, window_bounds = array<i64: 2, 64, 1>}, {transform_indices = @transform_3, window_bounds = array<i64: 32, 512>}]} {
    %c0 = arith.constant 0 : index
    %c0_0 = arith.constant 0 : index
    %0 = vector.load %arg1[%c0, %c0_0] : memref<32x512xf32, #tpu.memory_space<vmem>>, vector<32x512xf32>
    %c0_1 = arith.constant 0 : index
    %c0_2 = arith.constant 0 : index
    %c0_3 = arith.constant 0 : index
    %1 = vector.load %arg2[%c0_1, %c0_2, %c0_3] : memref<2x64x32xf32, #tpu.memory_space<vmem>>, vector<1x64x32xf32>
    %2 = vector.shape_cast %1 : vector<1x64x32xf32> to vector<64x32xf32>
    %cst = arith.constant dense<0.000000e+00> : vector<64x512xf32>
    %3 = tpu.matmul %2, %0, %cst {dimension_numbers = #tpu.dot_dimension_numbers<[1], [0], [0], [1], [0, 0, 1, 1], [], []>} : vector<64x32xf32>, vector<32x512xf32>, vector<64x512xf32> -> vector<64x512xf32>
    %c0_4 = arith.constant 0 : index
    %c0_5 = arith.constant 0 : index
    %c0_6 = arith.constant 0 : index
    %4 = vector.load %arg3[%c0_4, %c0_5, %c0_6] : memref<2x64x1xf32, #tpu.memory_space<vmem>>, vector<1x64x1xf32>
    %5 = vector.shape_cast %4 : vector<1x64x1xf32> to vector<64x1xf32>
    %6 = vector.broadcast %5 : vector<64x1xf32> to vector<64x512xf32>
    %7 = arith.addf %3, %6 : vector<64x512xf32>
    %8 = vector.extract_strided_slice %7 {offsets = [0, 0], sizes = [32, 512], strides = [1, 1]} : vector<64x512xf32> to vector<32x512xf32>
    %9 = arith.negf %8 : vector<32x512xf32>
    %10 = math.exp %9 : vector<32x512xf32>
    %cst_7 = arith.constant 1.000000e+00 : f32
    %11 = vector.broadcast %cst_7 : f32 to vector<32x512xf32>
    %12 = arith.addf %11, %10 : vector<32x512xf32>
    %13 = arith.divf %11, %12 : vector<32x512xf32>
    %14 = vector.extract_strided_slice %7 {offsets = [32, 0], sizes = [32, 512], strides = [1, 1]} : vector<64x512xf32> to vector<32x512xf32>
    %cst_8 = arith.constant 0.000000e+00 : f32
    %15 = vector.broadcast %cst_8 : f32 to vector<32x512xf32>
    %16 = arith.maximumf %14, %15 : vector<32x512xf32>
    %17 = arith.subf %16, %0 : vector<32x512xf32>
    %18 = arith.mulf %13, %17 : vector<32x512xf32>
    %19 = arith.addf %0, %18 : vector<32x512xf32>
    %c1 = arith.constant 1 : index
    %c0_9 = arith.constant 0 : index
    %c0_10 = arith.constant 0 : index
    %20 = vector.load %arg2[%c1, %c0_9, %c0_10] : memref<2x64x32xf32, #tpu.memory_space<vmem>>, vector<1x64x32xf32>
    %21 = vector.shape_cast %20 : vector<1x64x32xf32> to vector<64x32xf32>
    %cst_11 = arith.constant dense<0.000000e+00> : vector<64x512xf32>
    %22 = tpu.matmul %21, %19, %cst_11 {dimension_numbers = #tpu.dot_dimension_numbers<[1], [0], [0], [1], [0, 0, 1, 1], [], []>} : vector<64x32xf32>, vector<32x512xf32>, vector<64x512xf32> -> vector<64x512xf32>
    %c1_12 = arith.constant 1 : index
    %c0_13 = arith.constant 0 : index
    %c0_14 = arith.constant 0 : index
    %23 = vector.load %arg3[%c1_12, %c0_13, %c0_14] : memref<2x64x1xf32, #tpu.memory_space<vmem>>, vector<1x64x1xf32>
    %24 = vector.shape_cast %23 : vector<1x64x1xf32> to vector<64x1xf32>
    %25 = vector.broadcast %24 : vector<64x1xf32> to vector<64x512xf32>
    %26 = arith.addf %22, %25 : vector<64x512xf32>
    %27 = vector.extract_strided_slice %26 {offsets = [0, 0], sizes = [32, 512], strides = [1, 1]} : vector<64x512xf32> to vector<32x512xf32>
    %28 = arith.negf %27 : vector<32x512xf32>
    %29 = math.exp %28 : vector<32x512xf32>
    %cst_15 = arith.constant 1.000000e+00 : f32
    %30 = vector.broadcast %cst_15 : f32 to vector<32x512xf32>
    %31 = arith.addf %30, %29 : vector<32x512xf32>
    %32 = arith.divf %30, %31 : vector<32x512xf32>
    %33 = vector.extract_strided_slice %26 {offsets = [32, 0], sizes = [32, 512], strides = [1, 1]} : vector<64x512xf32> to vector<32x512xf32>
    %cst_16 = arith.constant 0.000000e+00 : f32
    %34 = vector.broadcast %cst_16 : f32 to vector<32x512xf32>
    %35 = arith.maximumf %33, %34 : vector<32x512xf32>
    %36 = arith.subf %35, %19 : vector<32x512xf32>
    %37 = arith.mulf %32, %36 : vector<32x512xf32>
    %38 = arith.addf %19, %37 : vector<32x512xf32>
    %c0_17 = arith.constant 0 : index
    %c0_18 = arith.constant 0 : index
    %39 = vector.load %arg4[%c0_17, %c0_18] : memref<32x512xf32, #tpu.memory_space<vmem>>, vector<32x512xf32>
    tpu.vector_store %arg4[%c0_17, %c0_18], %38 {strides = array<i32>} : memref<32x512xf32, #tpu.memory_space<vmem>>, vector<32x512xf32>,
    return
  }
  func.func @transform_0(%arg0: i32) -> (i32, i32) {
    %c0_i32 = arith.constant 0 : i32
    %c0_i32_0 = arith.constant 0 : i32
    return %c0_i32, %arg0 : i32, i32
  }
  func.func @transform_1(%arg0: i32) -> (i32, i32, i32) {
    %c0_i32 = arith.constant 0 : i32
    %c0_i32_0 = arith.constant 0 : i32
    %c0_i32_1 = arith.constant 0 : i32
    %c0_i32_2 = arith.constant 0 : i32
    return %c0_i32, %c0_i32_0, %c0_i32_1 : i32, i32, i32
  }
  func.func @transform_2(%arg0: i32) -> (i32, i32, i32) {
    %c0_i32 = arith.constant 0 : i32
    %c0_i32_0 = arith.constant 0 : i32
    %c0_i32_1 = arith.constant 0 : i32
    %c0_i32_2 = arith.constant 0 : i32
    return %c0_i32, %c0_i32_0, %c0_i32_1 : i32, i32, i32
  }
  func.func @transform_3(%arg0: i32) -> (i32, i32) {
    %c0_i32 = arith.constant 0 : i32
    %c0_i32_0 = arith.constant 0 : i32
    return %c0_i32, %arg0 : i32, i32
  }
}

</mosaic_0001>

<bundles_post_ra>
// kernel: tpu_custom_call.1
= control target key start
LH: loop header
LB: loop body
LE: loop exit
PB: predicated region body
PF: predicated region fallthrough
CT: control target
= control target key end

     0   :  { %8 = vsyncpa [#allocation4], 0  ;;  %s2142_s0 = inlined_call_operand.vmem [shape: f32[32,1024], index: 0, kind: input, shape index: {}]   ;;  %s2143_s1 = inlined_call_operand.vmem [shape: f32[2,64,32], index: 1, kind: input, shape index: {}]   ;;  %s2144_s2 = inlined_call_operand.vmem [shape: f32[2,64,1], index: 2, kind: input, shape index: {}]   ;;  %s2145_s3 = inlined_call_operand.hbm [shape: f32[32,1024], index: 3, kind: output, shape index: {}]  }
   0x1   :  { %10 = vsyncpa [#allocation4 + $0x1], 0  ;;  %s1628_s12 = smov 0   ;;  %s1630_s13 = smov 0  }
   0x2   :  { %s1632_s14 = smov 0   ;;  %s1634_s15 = smov 0  }
   0x3 LB: > { %s1269_s16 = sadd.s32 4294967295, %s1600_s15   ;;  %s1270_s17 = sadd.s32 4294967294, %s1600_s15   ;;  %s1600_s15 = sphi %s1634_s15, %s2151_s15   ;;  %s1596_s14 = sphi %s1632_s14, %s2150_s14   ;;  %s1592_s13 = sphi %s1630_s13, %s2149_s13   ;;  %s1588_s12 = sphi %s1628_s12, %s2148_s12  }
   0x4   : > { %s1651_s18 = sadd.s32 1, %s1600_s15   ;;  %s23_s19 = sadd.s32 1, %s1596_s14 }
   0x5   : > { %s20_s20 = ssub.s32 %s1600_s15, %s1651_s18  ;;  %p30_p0 = scmp.ne.s32.totalorder %s1596_s14, %s1592_s13 }
   0x6   : > { %p21_p1 = scmp.eq.s32.totalorder %s20_s20, 0  ;;  %p31_p2 = scmp.eq.s32.totalorder %s1600_s15, 0 }
   0x7   : > { %p102_p3 = scmp.eq.s32.totalorder %s1269_s16, 1  ;;  %p107_p4 = scmp.ne.s32.totalorder %s1592_s13, %s1588_s12 }
   0x8   : > { %s1664_s21 = scalar_select %p21_p1, %s1596_s14, %s23_s19  }
   0x9   : > { %p32_p5 = por %p31_p2, %p30_p0  ;;  %p1666_p6 = por %p102_p3, %p30_p0 }
   0xa   : > { %p108_p7 = scmp.eq.s32.totalorder %s1270_s17, 1  ;;  %p1272_p9 = scmp.ge.s32.totalorder %s1600_s15, 2 }
   0xc   : > { %p1670_p8 = por %p108_p7, %p107_p4  ;;  %130 = sbr.rel (%p1272_p9) target bundleno = 29 (0x1d), region = 24 }
  0x11   : > { %133 = sbr.rel (!%p32_p5) target bundleno = 29 (0x1d), region = 28  ;;  %s135_s24 = sand.u32 (%p32_p5), 1, %s1596_s14  }
  0x12   : > { %s1364_s25 = sshll.u32 (%p32_p5), %s1600_s15, 5  ;;  %s1273_s26 = sshll.u32 (%p32_p5), %s135_s24, 7 }
  0x13   : > { %s1682_s29 = scalar_lea.vmem (%p32_p5), %s2142_s0, %s1364_s25  ;;  %s137_s30 = scalar_lea.vmem (%p32_p5), [#allocation2], %s1273_s26 }
  0x14   : > { %v153_v0 = vld [vmem:[%s1682_s29] sm:$0xff] (%p32_p5)  ;;  %v155_v1 = vld [vmem:[%s1682_s29 + $0x8] sm:$0xff] (%p32_p5)  ;;  %v157_v2 = vld [vmem:[%s1682_s29 + $0x10] sm:$0xff] (%p32_p5) }
  0x15   : > { %154 = vst [vmem:[%s137_s30] sm:$0xff] (%p32_p5), %v153_v0  ;;  %156 = vst [vmem:[%s137_s30 + $0x8] sm:$0xff] (%p32_p5), %v155_v1  ;;  %v159_v3 = vld [vmem:[%s1682_s29 + $0x18] sm:$0xff] (%p32_p5)  ;;  %v161_v4 = vld [vmem:[%s1682_s29 + $0x40] sm:$0xff] (%p32_p5) }
  0x16   : > { %158 = vst [vmem:[%s137_s30 + $0x10] sm:$0xff] %v157_v2  ;;  %v163_v5 = vld [vmem:[%s1682_s29 + $0x48] sm:$0xff]  ;;  %160 = vst [vmem:[%s137_s30 + $0x18] sm:$0xff] %v159_v3  ;;  %v165_v6 = vld [vmem:[%s1682_s29 + $0x50] sm:$0xff] }
  0x17   : > { %162 = vst [vmem:[%s137_s30 + $0x20] sm:$0xff] %v161_v4  ;;  %164 = vst [vmem:[%s137_s30 + $0x28] sm:$0xff] %v163_v5  ;;  %v167_v7 = vld [vmem:[%s1682_s29 + $0x58] sm:$0xff]  ;;  %v169_v8 = vld [vmem:[%s1682_s29 + $0x80] sm:$0xff] }
  0x18   : > { %166 = vst [vmem:[%s137_s30 + $0x30] sm:$0xff] %v165_v6  ;;  %168 = vst [vmem:[%s137_s30 + $0x38] sm:$0xff] %v167_v7  ;;  %v171_v9 = vld [vmem:[%s1682_s29 + $0x88] sm:$0xff]  ;;  %v173_v10 = vld [vmem:[%s1682_s29 + $0x90] sm:$0xff] }
  0x19   : > { %170 = vst [vmem:[%s137_s30 + $0x40] sm:$0xff] %v169_v8  ;;  %v175_v11 = vld [vmem:[%s1682_s29 + $0x98] sm:$0xff]  ;;  %172 = vst [vmem:[%s137_s30 + $0x48] sm:$0xff] %v171_v9  ;;  %v177_v12 = vld [vmem:[%s1682_s29 + $0xc0] sm:$0xff] }
  0x1a   : > { %174 = vst [vmem:[%s137_s30 + $0x50] sm:$0xff] %v173_v10  ;;  %176 = vst [vmem:[%s137_s30 + $0x58] sm:$0xff] %v175_v11  ;;  %v179_v13 = vld [vmem:[%s1682_s29 + $0xc8] sm:$0xff]  ;;  %v181_v14 = vld [vmem:[%s1682_s29 + $0xd0] sm:$0xff] }
  0x1b   : > { %178 = vst [vmem:[%s137_s30 + $0x60] sm:$0xff] %v177_v12  ;;  %180 = vst [vmem:[%s137_s30 + $0x68] sm:$0xff] %v179_v13  ;;  %v183_v15 = vld [vmem:[%s1682_s29 + $0xd8] sm:$0xff] }
  0x1c   : > { %182 = vst [vmem:[%s137_s30 + $0x70] sm:$0xff] %v181_v14  ;;  %184 = vst [vmem:[%s137_s30 + $0x78] sm:$0xff] %v183_v15 }
  0x1d PF: > { %p1276_p10 = scmp.ge.s32.totalorder %s1600_s15, 1  ;;  %p189_p11 = scmp.lt.s32.totalorder %s1600_s15, 3 }
  0x1f   : > { %p190_p12 = pnand %p1276_p10, %p189_p11 }
  0x20   : > { %s196_s4 = sand.u32 (!%p190_p12), 1, %s1592_s13   ;;  %s1604_s19 = smov (!%p190_p12), [#allocation3]  }
  0x21   : > { %193 = sbr.rel (%p190_p12) target bundleno = 563 (0x233), region = 51  ;;  %s1705_s5 = sshll.u32 (!%p190_p12), %s196_s4, 7 }
  0x22   : > { %s198_s8 = scalar_lea.vmem (!%p190_p12), [#allocation2], %s1705_s5  ;;  %s2049_s7 = scalar_lea.vmem (!%p190_p12), [#allocation3], %s1705_s5 }
  0x23   : > { %s1365_s5 = sshll.u32 (!%p190_p12), %s1269_s16, 9  ;;  %s2101_s11 = scalar_lea.sflag (!%p190_p12), [#allocation4], %s196_s4 }
  0x24   : > { %s2089_s10 = scalar_lea.hbm (!%p190_p12), %s2145_s3, %s1365_s5  ;;  %s1544_s20 = sshll.u32 (!%p190_p12), %s1604_s19, 4  ;;  %s1545_s20 = int_to_ptr.vmem [resolvable:$false] %s1544_s20 }
  0x25   : > { %s1546_s24 = scalar_lea.vmem (!%p190_p12), %s1545_s20, 4096 }
  0x26   : > { %v1602_v16 = vmov 0.0   ;;  %v1603_v17 = vmov 0   ;;  %v248_v18 = vld [vmem:[%s2144_s2 + $0x18] sm:$0xff]  ;;  %v1713_v19 = vld [vmem:[%s198_s8 + $0x68] sm:$0xff]  ;;  %v1717_v21 = vld [vmem:[%s198_s8 + $0x60] sm:$0xff]  ;;  %vm293_vm0 = vcmask 261120  }
  0x27   : > { %382 = vmatprep.mubr.f32.mxu0 %v1602_v16  ;;  %495 = vmatprep.mubr.f32.mxu1 %v1602_v16  ;;  %v1715_v20 = vld [vmem:[%s198_s8 + $0x78] sm:$0xff]  ;;  %v1721_v22 = vld [vmem:[%s198_s8 + $0x70] sm:$0xff]  ;;  %v1723_v23 = vld [vmem:[%s198_s8 + $0x48] sm:$0xff] }
  0x28   : > { %1410 = vset.pattern.permute.xlu0 %v1603_v17  ;;  %1411 = vset.pattern.permute.xlu1 %v1603_v17  ;;  %v1725_v24 = vld [vmem:[%s198_s8 + $0x58] sm:$0xff]  ;;  %v1729_v25 = vld [vmem:[%s198_s8 + $0x40] sm:$0xff]  ;;  %v1731_v26 = vld [vmem:[%s198_s8 + $0x50] sm:$0xff] }
  0x29   : > { %270 = vperm.xlu0 %1410, %v248_v18   ;;  %342 = vmatprep.subr.mxu0 %v1713_v19  ;;  %v1733_v27 = vld [vmem:[%s198_s8 + $0x28] sm:$0xff]  ;;  %v1737_v28 = vld [vmem:[%s198_s8 + $0x38] sm:$0xff]  ;;  %v1739_v29 = vld [vmem:[%s198_s8 + $0x20] sm:$0xff] }
  0x2a   : > { %455 = vmatprep.subr.mxu1 %v1715_v20  ;;  %343 = vmatpush1.msra.mxu0 %v1717_v21  ;;  %v1741_v30 = vld [vmem:[%s198_s8 + $0x30] sm:$0xff]  ;;  %v1745_v31 = vld [vmem:[%s198_s8 + $0x8] sm:$0xff]  ;;  %v1747_v32 = vld [vmem:[%s198_s8 + $0x18] sm:$0xff] }
  0x2b   : > { %456 = vmatpush1.msra.mxu1 %v1721_v22  ;;  %344 = vmatprep.subr.mxu0 %v1723_v23  ;;  %v1751_v33 = vld [vmem:[%s198_s8] sm:$0xff]  ;;  %v1753_v34 = vld [vmem:[%s198_s8 + $0x10] sm:$0xff]  ;;  %v246_v37 = vld [vmem:[%s2144_s2 + $0x8] sm:$0xff]  ;;  %s1202_s8 = sshll.u32 %s2049_s7, 4  ;;  %s2093_s8 = int_to_ptr.vmem [resolvable:$true] %s1202_s8 }
  0x2c   : > { %457 = vmatprep.subr.mxu1 %v1725_v24  ;;  %345 = vmatpush1.msra.mxu0 %v1729_v25  ;;  %v237_v35 = vld [vmem:[%s2143_s1] sm:$0xff]  ;;  %v247_v36 = vld [vmem:[%s2144_s2 + $0x10] sm:$0xff]  ;;  %v238_v38 = vld [vmem:[%s2143_s1 + $0x8] sm:$0xff]  ;;  %s1540_s17 = scalar_lea.vmem %s2093_s8, 2048  ;;  %p1547_p2 = scmp.lt.s32.totalorder %s2093_s8, %s1545_s20 }
  0x2d   : > { %458 = vmatpush1.msra.mxu1 %v1731_v26  ;;  %346 = vmatprep.subr.mxu0 %v1733_v27  ;;  %v252_v39 = vld [vmem:[%s2144_s2 + $0x38] sm:$0xff]  ;;  %v245_v40 = vld [vmem:[%s2144_s2] sm:$0xff]  ;;  %v239_v41 = vld [vmem:[%s2143_s1 + $0x10] sm:$0xff]  ;;  %p1541_p13 = scmp.ne.s32.totalorder %s2093_s8, %s1540_s17  ;;  %p1548_p3 = scmp.lt.s32.totalorder %s1546_s24, %s1540_s17 }
  0x2e   : > { %459 = vmatprep.subr.mxu1 %v1737_v28  ;;  %347 = vmatpush1.msra.mxu0 %v1739_v29  ;;  %v250_v42 = vld [vmem:[%s2144_s2 + $0x28] sm:$0xff]  ;;  %v251_v43 = vld [vmem:[%s2144_s2 + $0x30] sm:$0xff]  ;;  %v240_v44 = vld [vmem:[%s2143_s1 + $0x18] sm:$0xff] }
  0x2f   : > { %460 = vmatpush1.msra.mxu1 %v1741_v30  ;;  %348 = vmatprep.subr.mxu0 %v1745_v31  ;;  %v1319_v45 = vld [vmem:[%s2144_s2 + $0x40] sm:$0xff]  ;;  %v1321_v48 = vld [vmem:[%s2144_s2 + $0x50] sm:$0xff]  ;;  %v1320_v49 = vld [vmem:[%s2144_s2 + $0x48] sm:$0xff]  ;;  %p1542_p0 = pnand %p1541_p13, %p1666_p6  ;;  %p1549_p4 = por %p1548_p3, %p1547_p2 }
  0x30   : > { %461 = vmatprep.subr.mxu1 %v1747_v32  ;;  %349 = vmatpush1.msra.mxu0 %v1751_v33  ;;  %v249_v46 = vld [vmem:[%s2144_s2 + $0x20] sm:$0xff]  ;;  %v242_v50 = vld [vmem:[%s2143_s1 + $0x28] sm:$0xff]  ;;  %v1322_v52 = vld [vmem:[%s2144_s2 + $0x58] sm:$0xff] }
  0x31   : > { %462 = vmatpush1.msra.mxu1 %v1753_v34  ;;  %1279 = vmatmul.mubr.msk.f32.vlgmr.msra.gmra.mxu0 %vm293_vm0, %v237_v35  ;;  %v241_v47 = vld [vmem:[%s2143_s1 + $0x20] sm:$0xff]  ;;  %v243_v53 = vld [vmem:[%s2143_s1 + $0x30] sm:$0xff]  ;;  %v1324_v55 = vld [vmem:[%s2144_s2 + $0x68] sm:$0xff]  ;;  %p1543_p1 = pneg %p1542_p0 }
  0x32   : > { %1287 = vmatmul.mubr.msk.f32.vlgmr.msra.gmra.mxu1 %vm293_vm0, %v237_v35  ;;  %388 = vmatprep.mubr.f32.mxu0 %v1602_v16  ;;  %v1323_v51 = vld [vmem:[%s2144_s2 + $0x60] sm:$0xff]  ;;  %v1325_v54 = vld [vmem:[%s2144_s2 + $0x70] sm:$0xff]  ;;  %v244_v56 = vld [vmem:[%s2143_s1 + $0x38] sm:$0xff] }
  0x33   : > { %501 = vmatprep.mubr.f32.mxu1 %v1602_v16  ;;  %265 = vperm.xlu0 %1410, %v247_v36   ;;  %v1326_v57 = vld [vmem:[%s2144_s2 + $0x78] sm:$0xff]  ;;  %p1550_p5 = pnand %p1549_p4, %p1543_p1 }
  0x34   : > { %260 = vperm.xlu1 %1411, %v246_v37  }
  0x35   : > { %1280 = vmatmul.mubr.msk.f32.gmra.mxu0 %vm293_vm0, %v238_v38 }
  0x36   : > { %1288 = vmatmul.mubr.msk.f32.gmra.mxu1 %vm293_vm0, %v238_v38  ;;  %394 = vmatprep.mubr.f32.mxu0 %v1602_v16 }
  0x37   : > { %507 = vmatprep.mubr.f32.mxu1 %v1602_v16  ;;  %290 = vperm.xlu0 %1410, %v252_v39  }
  0x38   : > { %255 = vperm.xlu1 %1411, %v245_v40  }
  0x39   : > { %1281 = vmatmul.mubr.msk.f32.gmra.mxu0 %vm293_vm0, %v239_v41 }
  0x3a   : > { %1289 = vmatmul.mubr.msk.f32.gmra.mxu1 %vm293_vm0, %v239_v41  ;;  %400 = vmatprep.mubr.f32.mxu0 %v1602_v16 }
  0x3b   : > { %513 = vmatprep.mubr.f32.mxu1 %v1602_v16  ;;  %280 = vperm.xlu0 %1410, %v250_v42  }
  0x3c   : > { %285 = vperm.xlu1 %1411, %v251_v43  }
  0x3d   : > { %1282 = vmatmul.mubr.msk.f32.gmra.mxu0 %vm293_vm0, %v240_v44 }
  0x3e   : > { %1290 = vmatmul.mubr.msk.f32.gmra.mxu1 %vm293_vm0, %v240_v44  ;;  %406 = vmatprep.mubr.f32.mxu0 %v1602_v16 }
  0x3f   : > { %519 = vmatprep.mubr.f32.mxu1 %v1602_v16  ;;  %724 = vperm.xlu0 %1410, %v1319_v45  }
  0x40   : > { %275 = vperm.xlu1 %1411, %v249_v46  }
  0x41   : > { %1283 = vmatmul.mubr.msk.f32.gmra.mxu0 %vm293_vm0, %v241_v47 }
  0x42   : > { %1291 = vmatmul.mubr.msk.f32.gmra.mxu1 %vm293_vm0, %v241_v47  ;;  %412 = vmatprep.mubr.f32.mxu0 %v1602_v16 }
  0x43   : > { %525 = vmatprep.mubr.f32.mxu1 %v1602_v16  ;;  %734 = vperm.xlu0 %1410, %v1321_v48  }
  0x44   : > { %729 = vperm.xlu1 %1411, %v1320_v49  }
  0x45   : > { %1284 = vmatmul.mubr.msk.f32.gmra.mxu0 %vm293_vm0, %v242_v50 }
  0x46   : > { %1292 = vmatmul.mubr.msk.f32.gmra.mxu1 %vm293_vm0, %v242_v50  ;;  %418 = vmatprep.mubr.f32.mxu0 %v1602_v16 }
  0x47   : > { %531 = vmatprep.mubr.f32.mxu1 %v1602_v16  ;;  %744 = vperm.xlu0 %1410, %v1323_v51  }
  0x48   : > { %739 = vperm.xlu1 %1411, %v1322_v52  }
  0x49   : > { %1285 = vmatmul.mubr.msk.f32.gmra.mxu0 %vm293_vm0, %v243_v53 }
  0x4a   : > { %1293 = vmatmul.mubr.msk.f32.gmra.mxu1 %vm293_vm0, %v243_v53  ;;  %424 = vmatprep.mubr.f32.mxu0 %v1602_v16 }
  0x4b   : > { %537 = vmatprep.mubr.f32.mxu1 %v1602_v16  ;;  %754 = vperm.xlu0 %1410, %v1325_v54  }
  0x4c   : > { %749 = vperm.xlu1 %1411, %v1324_v55  }
  0x4d   : > { %1286 = vmatmul.mubr.msk.f32.gmra.mxu0 %vm293_vm0, %v244_v56 }
  0x4e   : > { %1294 = vmatmul.mubr.msk.f32.gmra.mxu1 %vm293_vm0, %v244_v56  ;;  %850 = vmatprep.mubr.f32.mxu0 %v1602_v16 }
  0x4f   : > { %963 = vmatprep.mubr.f32.mxu1 %v1602_v16 }
  0x50   : > { %759 = vperm.xlu1 %1411, %v1326_v57  }
  0xa4   : > { %v271_v62 = vpop.permute.xlu0 %270 }
  0xae   : > { %v266_v15 = vpop.permute.xlu0 %265 }
  0xaf   : > { %v261_v58 = vpop.permute.xlu1 %260 }
  0xb3   : > { %v256_v59 = vpop.permute.xlu1 %255 }
  0xf1   : > { %v384_v60 = vpop.f32.mrf.mxu0 }
  0xf2   : > { %v497_v61 = vpop.f32.mrf.mxu1  ;;  %v385_v63 = vadd.f32 %v384_v60, %v256_v59 }
  0xf3   : > { %v498_v0 = vadd.f32 %v497_v61, %v256_v59  ;;  %v386_v1 = vpop.f32.mrf.mxu0 }
  0xf4   : > { %v499_v2 = vpop.f32.mrf.mxu1  ;;  %v1295_v3 = vmul.f32 -1.442695, %v385_v63  ;;  %v387_v5 = vadd.f32 %v386_v1, %v256_v59 }
  0xf5   : > { %v1297_v4 = vmul.f32 -1.442695, %v498_v0  ;;  %v500_v6 = vadd.f32 %v499_v2, %v256_v59  ;;  %v390_v7 = vpop.f32.mrf.mxu0 }
  0xf6   : > { %v503_v8 = vpop.f32.mrf.mxu1  ;;  %1412 = vpow2.f32 %v1295_v3  ;;  %v1296_v9 = vmul.f32 -1.442695, %v387_v5  ;;  %v391_v11 = vadd.f32 %v390_v7, %v261_v58 }
  0xf7   : > { %v1298_v10 = vmul.f32 -1.442695, %v500_v6  ;;  %1414 = vpow2.f32 %v1297_v4  ;;  %v504_v12 = vadd.f32 %v503_v8, %v261_v58  ;;  %v392_v13 = vpop.f32.mrf.mxu0 }
  0xf8   : > { %v505_v14 = vpop.f32.mrf.mxu1  ;;  %1416 = vpow2.f32 %v1296_v9  ;;  %v1299_v17 = vmul.f32 -1.442695, %v391_v11  ;;  %v393_v18 = vadd.f32 %v392_v13, %v261_v58 }
  0xf9   : > { %v506_v35 = vadd.f32 %v505_v14, %v261_v58  ;;  %1418 = vpow2.f32 %v1298_v10  ;;  %v1301_v36 = vmul.f32 -1.442695, %v504_v12  ;;  %v396_v37 = vpop.f32.mrf.mxu0 }
  0xfa   : > { %v509_v38 = vpop.f32.mrf.mxu1  ;;  %1420 = vpow2.f32 %v1299_v17  ;;  %v1300_v39 = vmul.f32 -1.442695, %v393_v18  ;;  %v397_v41 = vadd.f32 %v396_v37, %v266_v15 }
  0xfb   : > { %v1302_v40 = vmul.f32 -1.442695, %v506_v35  ;;  %1422 = vpow2.f32 %v1301_v36  ;;  %v510_v42 = vadd.f32 %v509_v38, %v266_v15  ;;  %v398_v43 = vpop.f32.mrf.mxu0 }
  0xfc   : > { %v511_v44 = vpop.f32.mrf.mxu1  ;;  %1424 = vpow2.f32 %v1300_v39  ;;  %v1303_v45 = vmul.f32 -1.442695, %v397_v41  ;;  %v399_v46 = vadd.f32 %v398_v43, %v266_v15 }
  0xfd   : > { %v512_v47 = vadd.f32 %v511_v44, %v266_v15  ;;  %1426 = vpow2.f32 %v1302_v40  ;;  %v1305_v48 = vmul.f32 -1.442695, %v510_v42  ;;  %v402_v49 = vpop.f32.mrf.mxu0 }
  0xfe   : > { %v515_v50 = vpop.f32.mrf.mxu1  ;;  %1428 = vpow2.f32 %v1303_v45  ;;  %v1304_v51 = vmul.f32 -1.442695, %v399_v46  ;;  %v403_v53 = vadd.f32 %v402_v49, %v271_v62 }
  0xff   : > { %v1306_v52 = vmul.f32 -1.442695, %v512_v47  ;;  %1430 = vpow2.f32 %v1305_v48  ;;  %v516_v54 = vadd.f32 %v515_v50, %v271_v62  ;;  %v404_v55 = vpop.f32.mrf.mxu0  ;;  %v286_v47 = vpop.permute.xlu1 %285 }
 0x100   : > { %v517_v56 = vpop.f32.mrf.mxu1  ;;  %1432 = vpow2.f32 %v1304_v51  ;;  %v1307_v57 = vmul.f32 -1.442695, %v403_v53  ;;  %v405_v58 = vadd.f32 %v404_v55, %v271_v62  ;;  %v291_v53 = vpop.permute.xlu0 %290 }
 0x101   : > { %v518_v59 = vadd.f32 %v517_v56, %v271_v62  ;;  %1434 = vpow2.f32 %v1306_v52  ;;  %v1309_v60 = vmul.f32 -1.442695, %v516_v54  ;;  %v1862_v61 = vpop.f32.mrf.mxu0 }
 0x102   : > { %v1864_v63 = vpop.f32.mrf.mxu1  ;;  %1436 = vpow2.f32 %v1307_v57  ;;  %v1308_v0 = vmul.f32 -1.442695, %v405_v58 }
 0x103   : > { %v1310_v1 = vmul.f32 -1.442695, %v518_v59  ;;  %v1413_v2 = vpop.eup %1412  ;;  %1438 = vpow2.f32 %v1309_v60  ;;  %v1866_v3 = vpop.f32.mrf.mxu0 }
 0x104   : > { %v1868_v4 = vpop.f32.mrf.mxu1  ;;  %v1415_v5 = vpop.eup %1414  ;;  %v592_v6 = vadd.f32 1.0, %v1413_v2  ;;  %1440 = vpow2.f32 %v1308_v0 }
 0x105   : > { %v1417_v7 = vpop.eup %1416  ;;  %v594_v62 = vadd.f32 1.0, %v1415_v5  ;;  %1442 = vpow2.f32 %v1310_v1  ;;  %v1870_v8 = vpop.f32.mrf.mxu0 }
 0x106   : > { %v1872_v9 = vpop.f32.mrf.mxu1  ;;  %v1419_v10 = vpop.eup %1418  ;;  %v593_v11 = vadd.f32 1.0, %v1417_v7  ;;  %1444 = vrcp.f32 %v592_v6 }
 0x107   : > { %v1421_v12 = vpop.eup %1420  ;;  %v1874_v13 = vpop.f32.mrf.mxu0  ;;  %1446 = vrcp.f32 %v594_v62  ;;  %v595_v1 = vadd.f32 1.0, %v1419_v10 }
 0x108   : > { %v1876_v14 = vpop.f32.mrf.mxu1  ;;  %v1423_v15 = vpop.eup %1422  ;;  %v596_v17 = vadd.f32 1.0, %v1421_v12  ;;  %1448 = vrcp.f32 %v593_v11 }
 0x109   : > { %v1425_v18 = vpop.eup %1424  ;;  %v1878_v35 = vpop.f32.mrf.mxu0  ;;  %v598_v59 = vadd.f32 1.0, %v1423_v15 }
 0x10a   : > { %v1427_v36 = vpop.eup %1426  ;;  %v597_v37 = vadd.f32 1.0, %v1425_v18  ;;  %v1880_v38 = vpop.f32.mrf.mxu1  ;;  %1450 = vrcp.f32 %v596_v17 }
 0x10b   : > { %v1429_v39 = vpop.eup %1428  ;;  %v599_v40 = vadd.f32 1.0, %v1427_v36  ;;  %v422_v45 = vpop.f32.mrf.mxu0 }
 0x10c   : > { %v1431_v41 = vpop.eup %1430  ;;  %1452 = vrcp.f32 %v597_v37  ;;  %v600_v42 = vadd.f32 1.0, %v1429_v39  ;;  %v535_v49 = vpop.f32.mrf.mxu1 }
 0x10d   : > { %v1433_v43 = vpop.eup %1432  ;;  %1454 = vrcp.f32 %v599_v40  ;;  %v602_v44 = vadd.f32 1.0, %v1431_v41  ;;  %v426_v57 = vpop.f32.mrf.mxu0 }
 0x10e   : > { %v1435_v46 = vpop.eup %1434  ;;  %1456 = vrcp.f32 %v600_v42  ;;  %v601_v48 = vadd.f32 1.0, %v1433_v43  ;;  %v539_v0 = vpop.f32.mrf.mxu1  ;;  %v423_v42 = vadd.f32 %v422_v45, %v286_v47 }
 0x10f   : > { %v1437_v50 = vpop.eup %1436  ;;  %1458 = vrcp.f32 %v602_v44  ;;  %v603_v51 = vadd.f32 1.0, %v1435_v46  ;;  %v276_v5 = vpop.permute.xlu1 %275  ;;  %v540_v43 = vadd.f32 %v539_v0, %v291_v53  ;;  %v536_v46 = vadd.f32 %v535_v49, %v286_v47 }
 0x110   : > { %v1439_v52 = vpop.eup %1438  ;;  %1460 = vrcp.f32 %v601_v48  ;;  %v604_v54 = vadd.f32 1.0, %v1437_v50  ;;  %v409_v7 = vadd.f32 %v1862_v61, %v276_v5  ;;  %v428_v62 = vpop.f32.mrf.mxu0  ;;  %v522_v15 = vadd.f32 %v1864_v63, %v276_v5 }
 0x111   : > { %v1441_v55 = vpop.eup %1440  ;;  %1462 = vrcp.f32 %v603_v51  ;;  %v606_v56 = vadd.f32 1.0, %v1439_v52  ;;  %v281_v12 = vpop.permute.xlu0 %280  ;;  %v411_v17 = vadd.f32 %v1866_v3, %v276_v5  ;;  %v524_v10 = vadd.f32 %v1868_v4, %v276_v5 }
 0x112   : > { %v1443_v58 = vpop.eup %1442  ;;  %1464 = vrcp.f32 %v604_v54  ;;  %v605_v60 = vadd.f32 1.0, %v1441_v55  ;;  %v541_v18 = vpop.f32.mrf.mxu1  ;;  %v415_v37 = vadd.f32 %v1870_v8, %v281_v12  ;;  %v528_v39 = vadd.f32 %v1872_v9, %v281_v12 }
 0x113   : > { %1466 = vrcp.f32 %v606_v56  ;;  %v607_v2 = vadd.f32 1.0, %v1443_v58  ;;  %v1882_v6 = vpop.eup %1444  ;;  %v427_v61 = vadd.f32 %v426_v57, %v291_v53  ;;  %v417_v41 = vadd.f32 %v1874_v13, %v281_v12 }
 0x114   : > { %1468 = vrcp.f32 %v605_v60  ;;  %v1885_v11 = vpop.eup %1446  ;;  %v429_v63 = vadd.f32 %v428_v62, %v291_v53  ;;  %v640_v3 = vmax.f32 %v409_v7, 0.0  ;;  %v421_v4 = vadd.f32 %v1878_v35, %v286_v47 }
 0x115   : > { %1470 = vrcp.f32 %v607_v2  ;;  %v1890_v36 = vpop.eup %1448  ;;  %v542_v48 = vadd.f32 %v541_v18, %v291_v53  ;;  %v642_v51 = vmax.f32 %v522_v15, 0.0  ;;  %v641_v52 = vmax.f32 %v411_v17, 0.0 }
 0x116   : > { %1472 = vrcp.f32 %v598_v59  ;;  %v643_v8 = vmax.f32 %v524_v10, 0.0  ;;  %v534_v9 = vadd.f32 %v1880_v38, %v286_v47  ;;  %v644_v55 = vmax.f32 %v415_v37, 0.0 }
 0x117   : > { %1474 = vrcp.f32 %v595_v1  ;;  %v1894_v40 = vpop.eup %1450  ;;  %v646_v56 = vmax.f32 %v528_v39, 0.0  ;;  %v530_v13 = vadd.f32 %v1876_v14, %v281_v12  ;;  %v652_v45 = vmax.f32 %v427_v61, 0.0 }
 0x118   : > { %v645_v58 = vmax.f32 %v417_v41, 0.0  ;;  %v649_v59 = vmax.f32 %v423_v42, 0.0  ;;  %v654_v60 = vmax.f32 %v540_v43, 0.0  ;;  %v653_v0 = vmax.f32 %v429_v63, 0.0 }
 0x119   : > { %v1453_v44 = vpop.eup %1452  ;;  %v656_v49 = vsub.f32 %v640_v3, %v1751_v33  ;;  %v648_v53 = vmax.f32 %v421_v4, 0.0  ;;  %v651_v1 = vmax.f32 %v536_v46, 0.0  ;;  %v655_v2 = vmax.f32 %v542_v48, 0.0 }
 0x11a   : > { %v1455_v50 = vpop.eup %1454  ;;  %v658_v38 = vsub.f32 %v642_v51, %v1753_v34  ;;  %v657_v47 = vsub.f32 %v641_v52, %v1745_v31  ;;  %v659_v7 = vsub.f32 %v643_v8, %v1747_v32  ;;  %v650_v14 = vmax.f32 %v534_v9, 0.0 }
 0x11b   : > { %v1457_v54 = vpop.eup %1456  ;;  %v660_v12 = vsub.f32 %v644_v55, %v1739_v29  ;;  %v662_v15 = vsub.f32 %v646_v56, %v1741_v30  ;;  %v647_v17 = vmax.f32 %v530_v13, 0.0  ;;  %v668_v10 = vsub.f32 %v652_v45, %v1717_v21 }
 0x11c   : > { %v1459_v57 = vpop.eup %1458  ;;  %v661_v37 = vsub.f32 %v645_v58, %v1733_v27  ;;  %v665_v39 = vsub.f32 %v649_v59, %v1723_v23  ;;  %v670_v61 = vsub.f32 %v654_v60, %v1721_v22  ;;  %v669_v41 = vsub.f32 %v653_v0, %v1713_v19 }
 0x11d   : > { %v1461_v35 = vpop.eup %1460  ;;  %v664_v43 = vsub.f32 %v648_v53, %v1729_v25  ;;  %v667_v63 = vsub.f32 %v651_v1, %v1725_v24  ;;  %v671_v4 = vsub.f32 %v655_v2, %v1715_v20  ;;  %v666_v48 = vsub.f32 %v650_v14, %v1731_v26 }
 0x11e   : > { %v1463_v5 = vpop.eup %1462  ;;  %v681_v51 = vmul.f32 %v1461_v35, %v665_v39  ;;  %v663_v55 = vsub.f32 %v647_v17, %v1737_v28  ;;  %v672_v59 = vmul.f32 %v1882_v6, %v656_v49  ;;  %v677_v60 = vmul.f32 %v1453_v44, %v661_v37  ;;  %v1317_v44 = vld [vmem:[%s2143_s1 + $0x70] sm:$0xff] }
 0x11f   : > { %v1465_v62 = vpop.eup %1464  ;;  %v680_v56 = vmul.f32 %v1457_v54, %v664_v43  ;;  %v683_v13 = vmul.f32 %v1463_v5, %v667_v63  ;;  %v682_v0 = vmul.f32 %v1459_v57, %v666_v48  ;;  %v676_v1 = vmul.f32 %v1894_v40, %v660_v12  ;;  %v725_v57 = vpop.permute.xlu0 %724 }
 0x120   : > { %v1467_v18 = vpop.eup %1466  ;;  %v684_v3 = vmul.f32 %v1465_v62, %v668_v10  ;;  %v679_v2 = vmul.f32 %v1455_v50, %v663_v55  ;;  %v673_v54 = vmul.f32 %v1890_v36, %v657_v47  ;;  %v1316_v36 = vld [vmem:[%s2143_s1 + $0x68] sm:$0xff]  ;;  %v1318_v50 = vld [vmem:[%s2143_s1 + $0x78] sm:$0xff] }
 0x121   : > { %v1469_v42 = vpop.eup %1468  ;;  %v686_v52 = vmul.f32 %v1467_v18, %v670_v61  ;;  %v1936_v40 = vadd.f32 %v680_v56, %v1729_v25  ;;  %v1953_v25 = vadd.f32 %v676_v1, %v1739_v29  ;;  %v1969_v29 = vadd.f32 %v672_v59, %v1751_v33  ;;  %v1314_v33 = vld [vmem:[%s2143_s1 + $0x58] sm:$0xff]  ;;  %v730_v18 = vpop.permute.xlu1 %729 }
 0x122   : > { %v1471_v46 = vpop.eup %1470  ;;  %v685_v8 = vmul.f32 %v1469_v42, %v669_v41  ;;  %v1922_v35 = vadd.f32 %v684_v3, %v1717_v21  ;;  %v674_v21 = vmul.f32 %v1885_v11, %v658_v38 }
 0x123   : > { %v1473_v9 = vpop.eup %1472  ;;  %v687_v45 = vmul.f32 %v1471_v46, %v671_v4  ;;  %v1929_v62 = vadd.f32 %v686_v52, %v1721_v22  ;;  %v1945_v22 = vadd.f32 %v682_v0, %v1731_v26 }
 0x124   : > { %v1475_v58 = vpop.eup %1474  ;;  %v1918_v53 = vadd.f32 %v685_v8, %v1713_v19  ;;  %v678_v5 = vmul.f32 %v1473_v9, %v662_v15  ;;  %v1933_v19 = vadd.f32 %v681_v51, %v1723_v23  ;;  %v1950_v23 = vadd.f32 %v677_v60, %v1733_v27  ;;  %v735_v51 = vpop.permute.xlu0 %734 }
 0x125   : > { %v1925_v14 = vadd.f32 %v687_v45, %v1715_v20  ;;  %v675_v6 = vmul.f32 %v1475_v58, %v659_v7  ;;  %v1941_v20 = vadd.f32 %v683_v13, %v1725_v24  ;;  %v1958_v24 = vadd.f32 %v679_v2, %v1737_v28  ;;  %v740_v2 = vpop.permute.xlu1 %739 }
 0x126   : > { %810 = vmatprep.subr.mxu0 %v1918_v53  ;;  %v1961_v26 = vadd.f32 %v678_v5, %v1741_v30  ;;  %v1966_v27 = vadd.f32 %v673_v54, %v1745_v31  ;;  %v1311_v30 = vld [vmem:[%s2143_s1 + $0x40] sm:$0xff]  ;;  %v1980_v11 = vadd.f32 %v674_v21, %v1753_v34  ;;  %v1312_v31 = vld [vmem:[%s2143_s1 + $0x48] sm:$0xff] }
 0x127   : > { %923 = vmatprep.subr.mxu1 %v1925_v14  ;;  %811 = vmatpush1.msra.mxu0 %v1922_v35  ;;  %v1974_v28 = vadd.f32 %v675_v6, %v1747_v32  ;;  %v1313_v32 = vld [vmem:[%s2143_s1 + $0x50] sm:$0xff]  ;;  %v1315_v34 = vld [vmem:[%s2143_s1 + $0x60] sm:$0xff] }
 0x128   : > { %924 = vmatpush1.msra.mxu1 %v1929_v62  ;;  %812 = vmatprep.subr.mxu0 %v1933_v19 }
 0x129   : > { %925 = vmatprep.subr.mxu1 %v1941_v20  ;;  %813 = vmatpush1.msra.mxu0 %v1936_v40 }
 0x12a   : > { %926 = vmatpush1.msra.mxu1 %v1945_v22  ;;  %814 = vmatprep.subr.mxu0 %v1950_v23 }
 0x12b   : > { %927 = vmatprep.subr.mxu1 %v1958_v24  ;;  %815 = vmatpush1.msra.mxu0 %v1953_v25 }
 0x12c   : > { %928 = vmatpush1.msra.mxu1 %v1961_v26  ;;  %816 = vmatprep.subr.mxu0 %v1966_v27 }
 0x12d   : > { %929 = vmatprep.subr.mxu1 %v1974_v28  ;;  %817 = vmatpush1.msra.mxu0 %v1969_v29 }
 0x12e   : > { %930 = vmatpush1.msra.mxu1 %v1980_v11  ;;  %1327 = vmatmul.mubr.msk.f32.vlgmr.msra.gmra.mxu0 %vm293_vm0, %v1311_v30 }
 0x12f   : > { %1335 = vmatmul.mubr.msk.f32.vlgmr.msra.gmra.mxu1 %vm293_vm0, %v1311_v30  ;;  %856 = vmatprep.mubr.f32.mxu0 %v1602_v16 }
 0x130   : > { %969 = vmatprep.mubr.f32.mxu1 %v1602_v16 }
 0x132   : > { %1328 = vmatmul.mubr.msk.f32.gmra.mxu0 %vm293_vm0, %v1312_v31 }
 0x133   : > { %1336 = vmatmul.mubr.msk.f32.gmra.mxu1 %vm293_vm0, %v1312_v31  ;;  %862 = vmatprep.mubr.f32.mxu0 %v1602_v16 }
 0x134   : > { %975 = vmatprep.mubr.f32.mxu1 %v1602_v16 }
 0x136   : > { %1329 = vmatmul.mubr.msk.f32.gmra.mxu0 %vm293_vm0, %v1313_v32 }
 0x137   : > { %1337 = vmatmul.mubr.msk.f32.gmra.mxu1 %vm293_vm0, %v1313_v32  ;;  %868 = vmatprep.mubr.f32.mxu0 %v1602_v16 }
 0x138   : > { %981 = vmatprep.mubr.f32.mxu1 %v1602_v16 }
 0x13a   : > { %1330 = vmatmul.mubr.msk.f32.gmra.mxu0 %vm293_vm0, %v1314_v33 }
 0x13b   : > { %1338 = vmatmul.mubr.msk.f32.gmra.mxu1 %vm293_vm0, %v1314_v33  ;;  %874 = vmatprep.mubr.f32.mxu0 %v1602_v16 }
 0x13c   : > { %987 = vmatprep.mubr.f32.mxu1 %v1602_v16 }
 0x13e   : > { %1331 = vmatmul.mubr.msk.f32.gmra.mxu0 %vm293_vm0, %v1315_v34 }
 0x13f   : > { %1339 = vmatmul.mubr.msk.f32.gmra.mxu1 %vm293_vm0, %v1315_v34  ;;  %880 = vmatprep.mubr.f32.mxu0 %v1602_v16 }
 0x140   : > { %993 = vmatprep.mubr.f32.mxu1 %v1602_v16 }
 0x142   : > { %1332 = vmatmul.mubr.msk.f32.gmra.mxu0 %vm293_vm0, %v1316_v36 }
 0x143   : > { %1340 = vmatmul.mubr.msk.f32.gmra.mxu1 %vm293_vm0, %v1316_v36  ;;  %886 = vmatprep.mubr.f32.mxu0 %v1602_v16 }
 0x144   : > { %999 = vmatprep.mubr.f32.mxu1 %v1602_v16 }
 0x146   : > { %1333 = vmatmul.mubr.msk.f32.gmra.mxu0 %vm293_vm0, %v1317_v44 }
 0x147   : > { %1341 = vmatmul.mubr.msk.f32.gmra.mxu1 %vm293_vm0, %v1317_v44  ;;  %892 = vmatprep.mubr.f32.mxu0 %v1602_v16 }
 0x148   : > { %1005 = vmatprep.mubr.f32.mxu1 %v1602_v16 }
 0x14a   : > { %1334 = vmatmul.mubr.msk.f32.gmra.mxu0 %vm293_vm0, %v1318_v50 }
 0x14b   : > { %1342 = vmatmul.mubr.msk.f32.gmra.mxu1 %vm293_vm0, %v1318_v50 }
 0x1ee   : > { %v852_v49 = vpop.f32.mrf.mxu0 }
 0x1ef   : > { %v853_v38 = vadd.f32 %v852_v49, %v725_v57  ;;  %v965_v47 = vpop.f32.mrf.mxu1 }
 0x1f0   : > { %v966_v7 = vadd.f32 %v965_v47, %v725_v57  ;;  %v854_v12 = vpop.f32.mrf.mxu0 }
 0x1f1   : > { %v1343_v15 = vmul.f32 -1.442695, %v853_v38  ;;  %v855_v17 = vadd.f32 %v854_v12, %v725_v57  ;;  %v967_v10 = vpop.f32.mrf.mxu1 }
 0x1f2   : > { %v1345_v37 = vmul.f32 -1.442695, %v966_v7  ;;  %v968_v39 = vadd.f32 %v967_v10, %v725_v57  ;;  %v858_v61 = vpop.f32.mrf.mxu0 }
 0x1f3   : > { %1476 = vpow2.f32 %v1343_v15  ;;  %v1344_v41 = vmul.f32 -1.442695, %v855_v17  ;;  %v859_v16 = vadd.f32 %v858_v61, %v730_v18  ;;  %v971_v42 = vpop.f32.mrf.mxu1  ;;  %v745_v61 = vpop.permute.xlu0 %744 }
 0x1f4   : > { %1478 = vpow2.f32 %v1345_v37  ;;  %v1346_v43 = vmul.f32 -1.442695, %v968_v39  ;;  %v972_v63 = vadd.f32 %v971_v42, %v730_v18  ;;  %v860_v3 = vpop.f32.mrf.mxu0 }
 0x1f5   : > { %1480 = vpow2.f32 %v1344_v41  ;;  %v1347_v4 = vmul.f32 -1.442695, %v859_v16  ;;  %v861_v46 = vadd.f32 %v860_v3, %v730_v18  ;;  %v973_v48 = vpop.f32.mrf.mxu1 }
 0x1f6   : > { %1482 = vpow2.f32 %v1346_v43  ;;  %v1349_v52 = vmul.f32 -1.442695, %v972_v63  ;;  %v974_v8 = vadd.f32 %v973_v48, %v730_v18  ;;  %v864_v9 = vpop.f32.mrf.mxu0 }
 0x1f7   : > { %1484 = vpow2.f32 %v1347_v4  ;;  %v1348_v55 = vmul.f32 -1.442695, %v861_v46  ;;  %v865_v56 = vadd.f32 %v864_v9, %v735_v51  ;;  %v977_v13 = vpop.f32.mrf.mxu1 }
 0x1f8   : > { %1486 = vpow2.f32 %v1349_v52  ;;  %v1350_v45 = vmul.f32 -1.442695, %v974_v8  ;;  %v978_v58 = vadd.f32 %v977_v13, %v735_v51  ;;  %v866_v59 = vpop.f32.mrf.mxu0  ;;  %v750_v13 = vpop.permute.xlu1 %749 }
 0x1f9   : > { %1488 = vpow2.f32 %v1348_v55  ;;  %v1351_v60 = vmul.f32 -1.442695, %v865_v56  ;;  %v867_v0 = vadd.f32 %v866_v59, %v735_v51  ;;  %v979_v1 = vpop.f32.mrf.mxu1 }
 0x1fa   : > { %1490 = vpow2.f32 %v1350_v45  ;;  %v1353_v54 = vmul.f32 -1.442695, %v978_v58  ;;  %v980_v5 = vadd.f32 %v979_v1, %v735_v51  ;;  %v870_v6 = vpop.f32.mrf.mxu0 }
 0x1fb   : > { %1492 = vpow2.f32 %v1351_v60  ;;  %v1352_v21 = vmul.f32 -1.442695, %v867_v0  ;;  %v871_v30 = vadd.f32 %v870_v6, %v740_v2  ;;  %v983_v31 = vpop.f32.mrf.mxu1 }
 0x1fc   : > { %1494 = vpow2.f32 %v1353_v54  ;;  %v1354_v32 = vmul.f32 -1.442695, %v980_v5  ;;  %v984_v33 = vadd.f32 %v983_v31, %v740_v2  ;;  %v872_v34 = vpop.f32.mrf.mxu0 }
 0x1fd   : > { %1496 = vpow2.f32 %v1352_v21  ;;  %v1355_v36 = vmul.f32 -1.442695, %v871_v30  ;;  %v873_v44 = vadd.f32 %v872_v34, %v740_v2  ;;  %v985_v50 = vpop.f32.mrf.mxu1 }
 0x1fe   : > { %1498 = vpow2.f32 %v1354_v32  ;;  %v1357_v57 = vmul.f32 -1.442695, %v984_v33  ;;  %v986_v49 = vadd.f32 %v985_v50, %v740_v2  ;;  %v876_v38 = vpop.f32.mrf.mxu0 }
 0x1ff   : > { %1500 = vpow2.f32 %v1355_v36  ;;  %v1356_v47 = vmul.f32 -1.442695, %v873_v44  ;;  %v989_v7 = vpop.f32.mrf.mxu1  ;;  %v877_v63 = vadd.f32 %v876_v38, %v745_v61 }
 0x200   : > { %v1477_v12 = vpop.eup %1476  ;;  %1502 = vpow2.f32 %v1357_v57  ;;  %v1358_v15 = vmul.f32 -1.442695, %v986_v49  ;;  %v878_v17 = vpop.f32.mrf.mxu0  ;;  %v990_v48 = vadd.f32 %v989_v7, %v745_v61 }
 0x201   : > { %v1479_v10 = vpop.eup %1478  ;;  %v1060_v18 = vadd.f32 1.0, %v1477_v12  ;;  %1504 = vpow2.f32 %v1356_v47  ;;  %v991_v37 = vpop.f32.mrf.mxu1  ;;  %v879_v9 = vadd.f32 %v878_v17, %v745_v61  ;;  %v1108_v1 = vmax.f32 %v877_v63, 0.0 }
 0x202   : > { %v1481_v39 = vpop.eup %1480  ;;  %v1062_v41 = vadd.f32 1.0, %v1479_v10  ;;  %1506 = vpow2.f32 %v1358_v15  ;;  %v882_v16 = vpop.f32.mrf.mxu0  ;;  %v992_v58 = vadd.f32 %v991_v37, %v745_v61  ;;  %v1110_v21 = vmax.f32 %v990_v48, 0.0 }
 0x203   : > { %v1483_v42 = vpop.eup %1482  ;;  %1508 = vrcp.f32 %v1060_v18  ;;  %v1061_v43 = vadd.f32 1.0, %v1481_v39  ;;  %v995_v3 = vpop.f32.mrf.mxu1  ;;  %v883_v2 = vadd.f32 %v882_v16, %v750_v13  ;;  %v1109_v33 = vmax.f32 %v879_v9, 0.0 }
 0x204   : > { %v1485_v4 = vpop.eup %1484  ;;  %1510 = vrcp.f32 %v1062_v41  ;;  %v1063_v46 = vadd.f32 1.0, %v1483_v42  ;;  %v884_v51 = vpop.f32.mrf.mxu0  ;;  %v996_v30 = vadd.f32 %v995_v3, %v750_v13  ;;  %v1111_v50 = vmax.f32 %v992_v58, 0.0 }
 0x205   : > { %v1487_v52 = vpop.eup %1486  ;;  %1512 = vrcp.f32 %v1061_v43  ;;  %v1064_v8 = vadd.f32 1.0, %v1485_v4  ;;  %v997_v55 = vpop.f32.mrf.mxu1  ;;  %v885_v34 = vadd.f32 %v884_v51, %v750_v13  ;;  %v1124_v7 = vsub.f32 %v1108_v1, %v1969_v29 }
 0x206   : > { %v1489_v56 = vpop.eup %1488  ;;  %1514 = vrcp.f32 %v1063_v46  ;;  %v1066_v45 = vadd.f32 1.0, %v1487_v52  ;;  %v888_v59 = vpop.f32.mrf.mxu0  ;;  %v998_v57 = vadd.f32 %v997_v55, %v750_v13  ;;  %v1112_v12 = vmax.f32 %v883_v2, 0.0 }
 0x207   : > { %v1491_v60 = vpop.eup %1490  ;;  %1516 = vrcp.f32 %v1064_v8  ;;  %v1065_v0 = vadd.f32 1.0, %v1489_v56  ;;  %v1001_v54 = vpop.f32.mrf.mxu1  ;;  %v1126_v18 = vsub.f32 %v1110_v21, %v1980_v11  ;;  %v1114_v37 = vmax.f32 %v996_v30, 0.0 }
 0x208   : > { %v1493_v5 = vpop.eup %1492  ;;  %1518 = vrcp.f32 %v1066_v45  ;;  %v1067_v6 = vadd.f32 1.0, %v1491_v60  ;;  %v890_v49 = vpop.f32.mrf.mxu0  ;;  %v1125_v41 = vsub.f32 %v1109_v33, %v1966_v27  ;;  %v1113_v16 = vmax.f32 %v885_v34, 0.0 }
 0x209   : > { %v1495_v31 = vpop.eup %1494  ;;  %1520 = vrcp.f32 %v1065_v0  ;;  %v1068_v32 = vadd.f32 1.0, %v1493_v5  ;;  %v1003_v15 = vpop.f32.mrf.mxu1  ;;  %v1127_v3 = vsub.f32 %v1111_v50, %v1974_v28  ;;  %v1115_v4 = vmax.f32 %v998_v57, 0.0 }
 0x20a   : > { %v1497_v36 = vpop.eup %1496  ;;  %1522 = vrcp.f32 %v1067_v6  ;;  %v1070_v44 = vadd.f32 1.0, %v1495_v31  ;;  %v755_v43 = vpop.permute.xlu0 %754  ;;  %v1128_v52 = vsub.f32 %v1112_v12, %v1953_v25  ;;  %v1130_v13 = vsub.f32 %v1114_v37, %v1961_v26 }
 0x20b   : > { %v1499_v38 = vpop.eup %1498  ;;  %1524 = vrcp.f32 %v1068_v32  ;;  %v1069_v47 = vadd.f32 1.0, %v1497_v36  ;;  %v894_v46 = vpop.f32.mrf.mxu0  ;;  %v889_v8 = vadd.f32 %v888_v59, %v755_v43  ;;  %v1002_v45 = vadd.f32 %v1001_v54, %v755_v43 }
 0x20c   : > { %v1501_v17 = vpop.eup %1500  ;;  %1526 = vrcp.f32 %v1070_v44  ;;  %v1071_v10 = vadd.f32 1.0, %v1499_v38  ;;  %v1007_v9 = vpop.f32.mrf.mxu1  ;;  %v1129_v0 = vsub.f32 %v1113_v16, %v1950_v23  ;;  %v891_v1 = vadd.f32 %v890_v49, %v755_v43 }
 0x20d   : > { %v1503_v39 = vpop.eup %1502  ;;  %1528 = vrcp.f32 %v1069_v47  ;;  %v1072_v61 = vadd.f32 1.0, %v1501_v17  ;;  %v760_v5 = vpop.permute.xlu1 %759  ;;  %v1131_v59 = vsub.f32 %v1115_v4, %v1958_v24  ;;  %v1004_v21 = vadd.f32 %v1003_v15, %v755_v43 }
 0x20e   : > { %v1505_v42 = vpop.eup %1504  ;;  %1530 = vrcp.f32 %v1071_v10  ;;  %v1074_v63 = vadd.f32 1.0, %v1503_v39  ;;  %v896_v30 = vpop.f32.mrf.mxu0  ;;  %v1116_v54 = vmax.f32 %v889_v8, 0.0  ;;  %v895_v34 = vadd.f32 %v894_v46, %v760_v5 }
 0x20f   : > { %v1507_v48 = vpop.eup %1506  ;;  %1532 = vrcp.f32 %v1072_v61  ;;  %v1073_v51 = vadd.f32 1.0, %v1505_v42  ;;  %v1009_v36 = vpop.f32.mrf.mxu1  ;;  %v1118_v49 = vmax.f32 %v1002_v45, 0.0  ;;  %v1008_v38 = vadd.f32 %v1007_v9, %v760_v5 }
 0x210   : > { %v1509_v55 = vpop.eup %1508  ;;  %1534 = vrcp.f32 %v1074_v63  ;;  %v1075_v56 = vadd.f32 1.0, %v1507_v48  ;;  %v1117_v12 = vmax.f32 %v891_v1, 0.0  ;;  %v897_v15 = vadd.f32 %v896_v30, %v760_v5 }
 0x211   : > { %v1511_v58 = vpop.eup %1510  ;;  %1536 = vrcp.f32 %v1073_v51  ;;  %v1140_v60 = vmul.f32 %v1509_v55, %v1124_v7  ;;  %v1010_v37 = vadd.f32 %v1009_v36, %v760_v5  ;;  %v1120_v16 = vmax.f32 %v895_v34, 0.0 }
 0x212   : > { %v1513_v2 = vpop.eup %1512  ;;  %1538 = vrcp.f32 %v1075_v56  ;;  %v1142_v6 = vmul.f32 %v1511_v58, %v1126_v18  ;;  %v1119_v18 = vmax.f32 %v1004_v21, 0.0  ;;  %v1133_v48 = vsub.f32 %v1117_v12, %v1933_v19 }
 0x213   : > { %v1515_v31 = vpop.eup %1514  ;;  %v1156_v32 = vadd.f32 %v1140_v60, %v1969_v29  ;;  %v1141_v33 = vmul.f32 %v1513_v2, %v1125_v41  ;;  %v1121_v51 = vmax.f32 %v897_v15, 0.0  ;;  %v1123_v55 = vmax.f32 %v1010_v37, 0.0 }
 0x214   : > { %v1517_v44 = vpop.eup %1516  ;;  %v1158_v50 = vadd.f32 %v1142_v6, %v1980_v11  ;;  %v1143_v57 = vmul.f32 %v1515_v31, %v1127_v3  ;;  %v1122_v3 = vmax.f32 %v1008_v38, 0.0  ;;  %v1135_v9 = vsub.f32 %v1119_v18, %v1941_v20 }
 0x215   : > { %v1519_v47 = vpop.eup %1518  ;;  %1172 = vst [vmem:[%s2049_s7] sm:$0xff] %v1156_v32  ;;  %v1157_v7 = vadd.f32 %v1141_v33, %v1966_v27  ;;  %v1144_v29 = vmul.f32 %v1517_v44, %v1128_v52  ;;  %v1132_v27 = vsub.f32 %v1116_v54, %v1936_v40  ;;  %v1136_v45 = vsub.f32 %v1120_v16, %v1922_v35 }
 0x216   : > { %v1521_v17 = vpop.eup %1520  ;;  %1174 = vst [vmem:[%s2049_s7 + $0x10] sm:$0xff] %v1158_v50  ;;  %v1159_v11 = vadd.f32 %v1143_v57, %v1974_v28  ;;  %v1146_v10 = vmul.f32 %v1519_v47, %v1130_v13  ;;  %v1134_v28 = vsub.f32 %v1118_v49, %v1945_v22  ;;  %v1139_v21 = vsub.f32 %v1123_v55, %v1925_v14 }
 0x217   : > { %v1523_v39 = vpop.eup %1522  ;;  %1173 = vst [vmem:[%s2049_s7 + $0x8] sm:$0xff] %v1157_v7  ;;  %v1160_v61 = vadd.f32 %v1144_v29, %v1953_v25  ;;  %v1145_v41 = vmul.f32 %v1521_v17, %v1129_v0  ;;  %v1138_v0 = vsub.f32 %v1122_v3, %v1929_v62 }
 0x218   : > { %v1525_v42 = vpop.eup %1524  ;;  %1175 = vst [vmem:[%s2049_s7 + $0x18] sm:$0xff] %v1159_v11  ;;  %v1162_v43 = vadd.f32 %v1146_v10, %v1961_v26  ;;  %v1147_v63 = vmul.f32 %v1523_v39, %v1131_v59 }
 0x219   : > { %v1527_v4 = vpop.eup %1526  ;;  %1176 = vst [vmem:[%s2049_s7 + $0x20] sm:$0xff] %v1160_v61  ;;  %v1161_v46 = vadd.f32 %v1145_v41, %v1950_v23  ;;  %v1148_v25 = vmul.f32 %v1525_v42, %v1132_v27 }
 0x21a   : > { %v1529_v52 = vpop.eup %1528  ;;  %1178 = vst [vmem:[%s2049_s7 + $0x30] sm:$0xff] %v1162_v43  ;;  %v1163_v8 = vadd.f32 %v1147_v63, %v1958_v24  ;;  %v1150_v26 = vmul.f32 %v1527_v4, %v1134_v28 }
 0x21b   : > { %v1531_v56 = vpop.eup %1530  ;;  %1177 = vst [vmem:[%s2049_s7 + $0x28] sm:$0xff] %v1161_v46  ;;  %v1164_v23 = vadd.f32 %v1148_v25, %v1936_v40  ;;  %v1149_v13 = vmul.f32 %v1529_v52, %v1133_v48  ;;  %v1137_v40 = vsub.f32 %v1121_v51, %v1918_v53 }
 0x21c   : > { %v1533_v58 = vpop.eup %1532  ;;  %1179 = vst [vmem:[%s2049_s7 + $0x38] sm:$0xff] %v1163_v8  ;;  %v1166_v60 = vadd.f32 %v1150_v26, %v1945_v22  ;;  %v1151_v24 = vmul.f32 %v1531_v56, %v1135_v9 }
 0x21d   : > { %v1535_v1 = vpop.eup %1534  ;;  %1180 = vst [vmem:[%s2049_s7 + $0x40] sm:$0xff] %v1164_v23  ;;  %v1165_v2 = vadd.f32 %v1149_v13, %v1933_v19  ;;  %v1152_v5 = vmul.f32 %v1533_v58, %v1136_v45 }
 0x21e   : > { %v1537_v6 = vpop.eup %1536  ;;  %1182 = vst [vmem:[%s2049_s7 + $0x50] sm:$0xff] %v1166_v60  ;;  %v1167_v22 = vadd.f32 %v1151_v24, %v1941_v20  ;;  %v1154_v59 = vmul.f32 %v1535_v1, %v1138_v0 }
 0x21f   : > { %v1539_v30 = vpop.eup %1538  ;;  %1181 = vst [vmem:[%s2049_s7 + $0x48] sm:$0xff] %v1165_v2  ;;  %v1168_v19 = vadd.f32 %v1152_v5, %v1922_v35  ;;  %v1153_v31 = vmul.f32 %v1537_v6, %v1137_v40 }
 0x220   : > { %1183 = vst [vmem:[%s2049_s7 + $0x58] sm:$0xff] %v1167_v22  ;;  %v1170_v32 = vadd.f32 %v1154_v59, %v1929_v62  ;;  %v1155_v33 = vmul.f32 %v1539_v30, %v1139_v21 }
 0x221   : > { %1184 = vst [vmem:[%s2049_s7 + $0x60] sm:$0xff] %v1168_v19  ;;  %v1169_v20 = vadd.f32 %v1153_v31, %v1918_v53 }
 0x222   : > { %1186 = vst [vmem:[%s2049_s7 + $0x70] sm:$0xff] %v1170_v32  ;;  %v1171_v35 = vadd.f32 %v1155_v33, %v1925_v14 }
 0x223   : > { %1185 = vst [vmem:[%s2049_s7 + $0x68] sm:$0xff] %v1169_v20 }
 0x224   : > { %1187 = vst [vmem:[%s2049_s7 + $0x78] sm:$0xff] %v1171_v35 }
 0x225   : > { %1553 = shalt.err (!%p1550_p5)
}
 0x226   : > { %s1554_s4 = scalar_lea.hbm %s2089_s10, 2048  ;;  %s1558_s27 = scalar_lea.hbm %s2145_s3, 4096 }
 0x227   : > { %p1555_p7 = scmp.ne.s32.totalorder %s2089_s10, %s1554_s4  ;;  %p1559_p12 = scmp.lt.s32.totalorder %s2089_s10, %s2145_s3 }
 0x228   : > { %p1560_p13 = scmp.lt.s32.totalorder %s1558_s27, %s1554_s4 }
 0x229   : > { %p1556_p10 = pnand %p1555_p7, %p1666_p6 }
 0x22a   : > { %p1561_p0 = por %p1560_p13, %p1559_p12 }
 0x22b   : > { %p1557_p11 = pneg %p1556_p10 }
 0x22d   : > { %p1562_p1 = pnand %p1561_p0, %p1557_p11 }
 0x22f   : > { %1565 = shalt.err (!%p1562_p1)
}
 0x230   : > { %s1605_s30 = smov 512   ;;  %s1606_s6 = smov 1024  }
 0x231   : > { %s1607_s7 = smov 32  }
 0x232   : > { %1366 = dma.vmem_to_hbm [thread:$0]  (%p1666_p6), %s2093_s8, 2048, %s2089_s10, %s2101_s11, %s1605_s30, %s1606_s6, %s1607_s7  }
 0x233 PF: > { %s1217_s5 = sand.u32 1, %s1588_s12   ;;  %p1369_p2 = pnand %p1272_p9, %p1670_p8 }
 0x234   : > { %s1218_s16 = scalar_lea.sflag [#allocation4], %s1217_s5 }
 0x235   : > { %p1370_p3 = pneg %p1369_p2 }
 0x237   : > { %1583 = dma.done.wait (%p1370_p3), %s1218_s16, 2048  }
 0x238   : > { %1585 = vsyncadd (%p1370_p3), %s1218_s16, 4294965248  ;;  %p13_p4 = scmp.ge.s32.totalorder %s1651_s18, 4   ;;  %s2148_s12 = smov %s1592_s13 }
 0x239   : > { %s2149_s13 = smov %s1596_s14  ;;  %s2150_s14 = smov %s1664_s21 }
 0x23a   : > { %s2151_s15 = smov %s1651_s18  ;;  %15 = sbr.rel (!%p13_p4) target bundleno = 3 (0x3), region = 97 }
 0x23f   :  { %1223 = vsyncpa [#allocation4], 1 }
 0x240   :  { %1225 = vsyncpa [#allocation4 + $0x1], 1 }

</bundles_post_ra>
